<compile_context>
chip_gen: v7x
topology: tpu7x:2x2x1
jax: 0.10.0
libtpu: 0.0.40
codegen_flags: <defaults>
</compile_context>

<pallas_src>
import functools
import math

import jax
import jax.numpy as jnp
from jax.experimental import pallas as pl
from jax.experimental.pallas import tpu as pltpu

_LANE = 128
_SUBLANE = 8
# Total bytes for the double-buffered per-tile working set (x tile + out tile).
_TILE_BYTES_BUDGET = 8 * 1024 * 1024
_MAX_ROW_TILE = 4096


def _round_up(v, m):
    return ((v + m - 1) // m) * m


def _row_tile(rows, bytes_per_row):
    """Largest row tile fitting the VMEM budget; multiple of 8 unless it covers
    the full extent (then the (8,128) constraint does not apply)."""
    tr = _TILE_BYTES_BUDGET // (2 * max(bytes_per_row, 1))
    tr = max(_SUBLANE, min(tr, _MAX_ROW_TILE, rows))
    if tr >= rows:
        return rows
    return max(_SUBLANE, (tr // _SUBLANE) * _SUBLANE)


def _pool_tiles(B, S, F, Cp, isz, osz, force_seq_tile=None):
    """Pick (batch_tile, seq_tile) for the pooled kernels."""
    tb_min = B if B < _SUBLANE else _SUBLANE
    per_b_full = S * F * isz + Cp * osz
    if force_seq_tile is not None:
        ts = min(int(force_seq_tile), S)
        if ts < S:
            ts = max(_SUBLANE, (ts // _SUBLANE) * _SUBLANE)
    elif 2 * tb_min * per_b_full <= _TILE_BYTES_BUDGET:
        ts = S
    else:
        ts = _TILE_BYTES_BUDGET // (2 * tb_min * F * isz)
        ts = min(max(ts, 1), S)
        if ts < S:
            ts = max(_SUBLANE, (ts // _SUBLANE) * _SUBLANE)
    if ts >= S:
        ts = S
        tb = _TILE_BYTES_BUDGET // (2 * per_b_full)
        tb = max(tb_min, min(tb, _MAX_ROW_TILE, B))
        if tb < B:
            tb = max(_SUBLANE, (tb // _SUBLANE) * _SUBLANE)
        else:
            tb = B
    else:
        tb = tb_min
    return tb, ts


# ------------------------------ kernels -------------------------------------


def _linear_kernel(x_ref, w_ref, b_ref, o_ref):
    # x_ref: (TR, F)  w_ref: (F, Cp)  b_ref: (1, Cp) f32  o_ref: (TR, Cp)
    logits = jnp.dot(x_ref[...], w_ref[...],
                     preferred_element_type=jnp.float32)
    o_ref[...] = (logits + b_ref[...]).astype(o_ref.dtype)


def _pool_linear_kernel(x_ref, w_ref, b_ref, o_ref, *, pooling_type, seq_len):
    # Whole sequence resident: x_ref: (TB, S, F)  o_ref: (TB, Cp)
    x = x_ref[...]
    if pooling_type == "max":
        pooled = jnp.max(x, axis=1)                        # exact in input dtype
    else:  # "avg": accumulate in f32, fold 1/S before the matmul
        pooled = jnp.sum(x, axis=1, dtype=jnp.float32) * (1.0 / seq_len)
    logits = jnp.dot(pooled.astype(x.dtype), w_ref[...],
                     preferred_element_type=jnp.float32)
    o_ref[...] = (logits + b_ref[...]).astype(o_ref.dtype)


def _pool_linear_acc_kernel(x_ref, w_ref, b_ref, o_ref, acc_ref, *,
                            pooling_type, seq_len, seq_tile):
    # Sequence tiled: x_ref: (TB, TS, F)  acc_ref: (TB, F) f32  o_ref: (TB, Cp)
    s = pl.program_id(1)
    x = x_ref[...]
    if seq_len % seq_tile != 0:
        # Mask the padded tail of the last partial seq block.
        idx = jax.lax.broadcasted_iota(jnp.int32, x.shape, 1) + s * seq_tile
        valid = idx < seq_len
        if pooling_type == "max":
            x = jnp.where(valid, x, jnp.array(-jnp.inf, dtype=x.dtype))
        else:
            x = jnp.where(valid, x, jnp.zeros((), dtype=x.dtype))

    if pooling_type == "max":
        part = jnp.max(x, axis=1).astype(jnp.float32)

        @pl.when(s == 0)
        def _():
            acc_ref[...] = part

        @pl.when(s != 0)
        def _():
            acc_ref[...] = jnp.maximum(acc_ref[...], part)
    else:
        part = jnp.sum(x, axis=1, dtype=jnp.float32)

        @pl.when(s == 0)
        def _():
            acc_ref[...] = part

        @pl.when(s != 0)
        def _():
            acc_ref[...] = acc_ref[...] + part

    @pl.when(s == pl.num_programs(1) - 1)
    def _():
        pooled = acc_ref[...]
        if pooling_type == "avg":
            pooled = pooled * (1.0 / seq_len)
        logits = jnp.dot(pooled.astype(x_ref.dtype), w_ref[...],
                         preferred_element_type=jnp.float32)
        o_ref[...] = (logits + b_ref[...]).astype(o_ref.dtype)


# ------------------------------ runners -------------------------------------


def _run_linear(rows_x, w_t, b2d, out_dtype):
    rows, F = rows_x.shape
    Cp = w_t.shape[1]
    isz = jnp.dtype(rows_x.dtype).itemsize
    osz = jnp.dtype(out_dtype).itemsize
    tr = _row_tile(rows, F * isz + Cp * osz)
    cost = pl.CostEstimate(
        flops=2 * rows * F * Cp,
        transcendentals=0,
        bytes_accessed=rows * F * isz
        + F * Cp * jnp.dtype(w_t.dtype).itemsize
        + rows * Cp * osz,
    )
    return pl.pallas_call(
        _linear_kernel,
        out_shape=jax.ShapeDtypeStruct((rows, Cp), out_dtype),
        grid=(pl.cdiv(rows, tr),),
        in_specs=[
            pl.BlockSpec((tr, F), lambda i: (i, 0)),
            pl.BlockSpec((F, Cp), lambda i: (0, 0)),   # resident across grid
            pl.BlockSpec((1, Cp), lambda i: (0, 0)),
        ],
        out_specs=pl.BlockSpec((tr, Cp), lambda i: (i, 0)),
        compiler_params=pltpu.CompilerParams(
            dimension_semantics=("parallel",)),
        cost_estimate=cost,
    )(rows_x, w_t, b2d)


def _run_pool_linear(x, w_t, b2d, pooling_type, force_seq_tile=None):
    B, S, F = x.shape
    Cp = w_t.shape[1]
    isz = jnp.dtype(x.dtype).itemsize
    osz = isz
    tb, ts = _pool_tiles(B, S, F, Cp, isz, osz, force_seq_tile)
    cost = pl.CostEstimate(
        flops=2 * B * F * Cp + B * S * F,
        transcendentals=0,
        bytes_accessed=B * S * F * isz
        + F * Cp * jnp.dtype(w_t.dtype).itemsize
        + B * Cp * osz,
    )

    if ts == S:
        kern = functools.partial(_pool_linear_kernel,
                                 pooling_type=pooling_type, seq_len=S)
        return pl.pallas_call(
            kern,
            out_shape=jax.ShapeDtypeStruct((B, Cp), x.dtype),
            grid=(pl.cdiv(B, tb),),
            in_specs=[
                pl.BlockSpec((tb, S, F), lambda i: (i, 0, 0)),
                pl.BlockSpec((F, Cp), lambda i: (0, 0)),   # resident
                pl.BlockSpec((1, Cp), lambda i: (0, 0)),
            ],
            out_specs=pl.BlockSpec((tb, Cp), lambda i: (i, 0)),
            compiler_params=pltpu.CompilerParams(
                dimension_semantics=("parallel",)),
            cost_estimate=cost,
        )(x, w_t, b2d)

    kern = functools.partial(_pool_linear_acc_kernel,
                             pooling_type=pooling_type, seq_len=S, seq_tile=ts)
    return pl.pallas_call(
        kern,
        out_shape=jax.ShapeDtypeStruct((B, Cp), x.dtype),
        grid=(pl.cdiv(B, tb), pl.cdiv(S, ts)),
        in_specs=[
            pl.BlockSpec((tb, ts, F), lambda b, s: (b, s, 0)),
            pl.BlockSpec((F, Cp), lambda b, s: (0, 0)),    # resident
            pl.BlockSpec((1, Cp), lambda b, s: (0, 0)),
        ],
        out_specs=pl.BlockSpec((tb, Cp), lambda b, s: (b, 0)),  # acc across s
        scratch_shapes=[pltpu.VMEM((tb, F), jnp.float32)],
        compiler_params=pltpu.CompilerParams(
            dimension_semantics=("parallel", "arbitrary")),
        cost_estimate=cost,
    )(x, w_t, b2d)


# ------------------------------ public API -----------------------------------


def finetuner_forward(x, weight, bias, pooling_type=None, _force_seq_tile=None):
    """FineTuner forward (eval mode: dropout is identity).

    x: (B, S, F); weight: (C, F) PyTorch layout; bias: (C,).
    Returns (B, C) for pooled modes, (B, S, C) when pooling_type is None.
    """
    if pooling_type == "att":
        # TODO(synk): 'att' pooling requires the external AttentionBlock.
        raise NotImplementedError("pooling_type='att' is not implemented")

    B, S, F = x.shape
    C = weight.shape[0]

    # Lane-dense classifier: pad classes up to a multiple of 128 (only when
    # needed) so output stores are unmasked; slice valid classes afterwards.
    Cp = _round_up(C, _LANE)
    if Cp == C:
        w_t = weight.T                                       # (F, Cp)
        b2d = bias.astype(jnp.float32).reshape(1, Cp)        # (1, Cp) f32
    else:
        w_t = jnp.pad(weight.T, ((0, 0), (0, Cp - C)))
        b2d = jnp.pad(bias, (0, Cp - C)).astype(jnp.float32).reshape(1, Cp)

    if pooling_type in ("max", "avg"):
        out = _run_pool_linear(x, w_t, b2d, pooling_type,
                               force_seq_tile=_force_seq_tile)
        return out if Cp == C else out[:, :C]

    if pooling_type == "cls":
        # Only CLS tokens enter the kernel DMA: S-fold fewer bytes moved.
        rows_x = x[:, 0, :]                                  # (B, F)
        out = _run_linear(rows_x, w_t, b2d, x.dtype)
        return out if Cp == C else out[:, :C]

    # No pooling: per-token classifier over B*S rows (free wrapper reshape).
    rows_x = x.reshape(B * S, F)
    out = _run_linear(rows_x, w_t, b2d, x.dtype)
    out = out if Cp == C else out[:, :C]
    return out.reshape(B, S, C)


def _reference(x, weight, bias, pooling_type=None):
    if pooling_type == "cls":
        xp = x[:, 0]
    elif pooling_type == "max":
        xp = jnp.max(x, axis=1)
    elif pooling_type == "avg":
        xp = jnp.mean(x, axis=1)
    else:
        xp = x
    return xp @ weight.T + bias


if __name__ == "__main__":
    key = jax.random.PRNGKey(0)
    kx, kw, kb, kx2, kx3, kw2, kb2 = jax.random.split(key, 7)

    ok = True

    def check(x, weight, bias, pooling_type, force_seq_tile=None):
        global ok
        out = finetuner_forward(x, weight, bias, pooling_type=pooling_type,
                                _force_seq_tile=force_seq_tile)
        out = jax.block_until_ready(out)
        ref = _reference(x, weight, bias, pooling_type=pooling_type)
        if not jnp.allclose(out, ref, atol=1e-5, rtol=1e-5):
            ok = False
            print(f"MISMATCH pooling={pooling_type} "
                  f"shape={tuple(x.shape)} C={weight.shape[0]} "
                  f"force_ts={force_seq_tile}")

    # Shapes implied by the module: x is (batch, seq, n_features).
    B, S, F, C = 2, 8, 32, 8
    x = jax.random.normal(kx, (B, S, F), dtype=jnp.float32)
    # classifier.weight ~ N(0, sqrt(2 / num_class)), shape (C, F)
    weight = jax.random.normal(kw, (C, F), dtype=jnp.float32) * math.sqrt(2.0 / C)
    bound = 1.0 / math.sqrt(F)
    bias = jax.random.uniform(kb, (C,), dtype=jnp.float32,
                              minval=-bound, maxval=bound)

    # Base paths (single-seq-tile fused pooling, cls fast path, per-token path).
    for pt in (None, "cls", "max", "avg"):
        check(x, weight, bias, pt)

    # Sequence-tiled accumulator path, including the masked partial tail tile.
    for S2 in (24, 20):
        x2 = jax.random.normal(kx2 if S2 == 24 else kx3, (B, S2, F),
                               dtype=jnp.float32)
        for pt in ("max", "avg"):
            check(x2, weight, bias, pt, force_seq_tile=8)

    # Lane-aligned class count (skips the pad/slice path entirely).
    C2 = 128
    weight2 = jax.random.normal(kw2, (C2, F), dtype=jnp.float32) * math.sqrt(2.0 / C2)
    bias2 = jax.random.uniform(kb2, (C2,), dtype=jnp.float32,
                               minval=-bound, maxval=bound)
    check(x, weight2, bias2, "cls")
    check(x, weight2, bias2, "avg")

    if ok:
        print("KERNEL_OK")
</pallas_src>

<mosaic_0001>
module attributes {stable_mosaic.version = 11 : i64} {
  func.func @_linear_kernel(%arg0: i32, %arg1: memref<16x32xf32, #tpu.memory_space<vmem>>, %arg2: memref<32x128xf32, #tpu.memory_space<vmem>>, %arg3: memref<1x128xf32, #tpu.memory_space<vmem>>, %arg4: memref<16x128xf32, #tpu.memory_space<vmem>>) attributes {dimension_semantics = [#tpu.dimension_semantics<parallel>], iteration_bounds = array<i64: 1>, scalar_prefetch = 0 : i64, scratch_operands = 0 : i64, tpu.core_type = #tpu.core_type<tc>, window_params = [{transform_indices = @transform_0, window_bounds = array<i64: 16, 32>}, {pipeline_mode = #tpu.pipeline_mode<synchronous>, transform_indices = @transform_1, window_bounds = array<i64: 32, 128>}, {pipeline_mode = #tpu.pipeline_mode<synchronous>, transform_indices = @transform_2, window_bounds = array<i64: 1, 128>}, {transform_indices = @transform_3, window_bounds = array<i64: 16, 128>}]} {
    %c0 = arith.constant 0 : index
    %c0_0 = arith.constant 0 : index
    %0 = vector.load %arg1[%c0, %c0_0] : memref<16x32xf32, #tpu.memory_space<vmem>>, vector<16x32xf32>
    %c0_1 = arith.constant 0 : index
    %c0_2 = arith.constant 0 : index
    %1 = vector.load %arg2[%c0_1, %c0_2] : memref<32x128xf32, #tpu.memory_space<vmem>>, vector<32x128xf32>
    %cst = arith.constant dense<0.000000e+00> : vector<16x128xf32>
    %2 = tpu.matmul %0, %1, %cst {dimension_numbers = #tpu.dot_dimension_numbers<[1], [0], [0], [1], [0, 0, 1, 1], [], []>} : vector<16x32xf32>, vector<32x128xf32>, vector<16x128xf32> -> vector<16x128xf32>
    %c0_3 = arith.constant 0 : index
    %c0_4 = arith.constant 0 : index
    %3 = vector.load %arg3[%c0_3, %c0_4] : memref<1x128xf32, #tpu.memory_space<vmem>>, vector<1x128xf32>
    %4 = vector.broadcast %3 : vector<1x128xf32> to vector<16x128xf32>
    %5 = arith.addf %2, %4 : vector<16x128xf32>
    %c0_5 = arith.constant 0 : index
    %c0_6 = arith.constant 0 : index
    %6 = vector.load %arg4[%c0_5, %c0_6] : memref<16x128xf32, #tpu.memory_space<vmem>>, vector<16x128xf32>
    tpu.vector_store %arg4[%c0_5, %c0_6], %5 {strides = array<i32>} : memref<16x128xf32, #tpu.memory_space<vmem>>, vector<16x128xf32>,
    return
  }
  func.func @transform_0(%arg0: i32) -> (i32, i32) {
    %c0_i32 = arith.constant 0 : i32
    %c0_i32_0 = arith.constant 0 : i32
    return %arg0, %c0_i32 : i32, i32
  }
  func.func @transform_1(%arg0: i32) -> (i32, i32) {
    %c0_i32 = arith.constant 0 : i32
    %c0_i32_0 = arith.constant 0 : i32
    %c0_i32_1 = arith.constant 0 : i32
    return %c0_i32, %c0_i32_0 : i32, i32
  }
  func.func @transform_2(%arg0: i32) -> (i32, i32) {
    %c0_i32 = arith.constant 0 : i32
    %c0_i32_0 = arith.constant 0 : i32
    %c0_i32_1 = arith.constant 0 : i32
    return %c0_i32, %c0_i32_0 : i32, i32
  }
  func.func @transform_3(%arg0: i32) -> (i32, i32) {
    %c0_i32 = arith.constant 0 : i32
    %c0_i32_0 = arith.constant 0 : i32
    return %arg0, %c0_i32 : i32, i32
  }
}

</mosaic_0001>

<bundles_post_ra>
// kernel: tpu_custom_call.1
= control target key start
LH: loop header
LB: loop body
LE: loop exit
PB: predicated region body
PF: predicated region fallthrough
CT: control target
= control target key end

     0   :  { %8 = vsyncpa [#allocation3], 0  ;;  %s336_s0 = inlined_call_operand.hbm [shape: f32[16,32], index: 0, kind: input, shape index: {}]   ;;  %s337_s1 = inlined_call_operand.hbm [shape: f32[32,128], index: 1, kind: input, shape index: {}]   ;;  %s338_s2 = inlined_call_operand.vmem [shape: f32[1,128], index: 2, kind: input, shape index: {}]   ;;  %s339_s3 = inlined_call_operand.hbm [shape: f32[16,128], index: 3, kind: output, shape index: {}]  }
   0x1   :  { %9 = vsyncpa [#allocation6], 0 }
   0x2   :  { %10 = vsyncpa [#allocation4], 0  ;;  %s263_s12 = smov [#allocation2]   ;;  %s191_s16 = scalar_lea.hbm %s336_s0, 256 }
   0x3   :  { %s16_s13 = sshll.u32 %s263_s12, 4  ;;  %p192_p0 = scmp.ne.s32.totalorder %s336_s0, %s191_s16  ;;  %s17_s13 = int_to_ptr.vmem [resolvable:$true] %s16_s13 }
   0x4   :  { %p195_p1 = scmp.lt.u32.totalorder %s191_s16, %s336_s0 }
   0x6   :  { %p197_p2 = pnand %p195_p1, %p192_p0 }
   0x8   :  { %200 = shalt.err (!%p197_p2)
}
   0x9   :  { %s201_s21 = scalar_lea.vmem %s17_s13, 256  ;;  %p206_p4 = scmp.lt.s32.totalorder %s17_s13, %s17_s13 }
   0xa   :  { %p202_p3 = scmp.ne.s32.totalorder %s17_s13, %s201_s21  ;;  %p207_p5 = scmp.lt.s32.totalorder %s201_s21, %s201_s21 }
   0xc   :  { %p208_p6 = por %p207_p5, %p206_p4 }
   0xe   :  { %p209_p7 = pnand %p208_p6, %p202_p3 }
  0x10   :  { %212 = shalt.err (!%p209_p7)
}
  0x11   :  { %s264_s22 = smov 128   ;;  %s265_s23 = smov 8  }
  0x12   :  { %22 = dma.hbm_to_vmem [thread:$0]  %s336_s0, 256, %s17_s13, [#allocation3], %s264_s22, %s264_s22, %s265_s23  }
  0x13   :  { %s266_s26 = smov [#allocation5]   ;;  %s213_s30 = scalar_lea.hbm %s337_s1, 512 }
  0x14   :  { %s28_s27 = sshll.u32 %s266_s26, 4  ;;  %p214_p8 = scmp.ne.s32.totalorder %s337_s1, %s213_s30  ;;  %s29_s27 = int_to_ptr.vmem [resolvable:$true] %s28_s27 }
  0x15   :  { %p217_p9 = scmp.lt.u32.totalorder %s213_s30, %s337_s1 }
  0x17   :  { %p219_p10 = pnand %p217_p9, %p214_p8 }
  0x19   :  { %222 = shalt.err (!%p219_p10)
}
  0x1a   :  { %s223_s8 = scalar_lea.vmem %s29_s27, 512  ;;  %p228_p12 = scmp.lt.s32.totalorder %s29_s27, %s29_s27 }
  0x1b   :  { %p224_p11 = scmp.ne.s32.totalorder %s29_s27, %s223_s8  ;;  %p229_p13 = scmp.lt.s32.totalorder %s223_s8, %s223_s8 }
  0x1d   :  { %p230_p0 = por %p229_p13, %p228_p12 }
  0x1f   :  { %p231_p1 = pnand %p230_p0, %p224_p11 }
  0x21   :  { %234 = shalt.err (!%p231_p1)
}
  0x22   :  { %34 = dma.hbm_to_vmem [thread:$0]  %s337_s1, 512, %s29_s27, [#allocation6], %s264_s22, %s264_s22, %s265_s23  }
  0x23   :  { %257 = dma.done.wait [#allocation3], 256  }
  0x24   :  { %258 = vsyncadd [#allocation3], 4294967040 }
  0x25   :  { %259 = dma.done.wait [#allocation6], 512  }
  0x26   :  { %260 = vsyncadd [#allocation6], 4294966784  ;;  %vm56_vm0 = vcmask 261120   ;;  %v45_v0 = vld [vmem:[#allocation5] sm:$0xff]  ;;  %v46_v1 = vld [vmem:[#allocation5 + $0x8] sm:$0xff]  ;;  %s267_s11 = smov [#allocation7]  }
  0x27   :  { %v47_v2 = vld [vmem:[#allocation5 + $0x10] sm:$0xff]  ;;  %v178_v3 = vpack.c.bf16 %v46_v1, %v45_v0  ;;  %v48_v4 = vld [vmem:[#allocation5 + $0x18] sm:$0xff]  ;;  %s145_s12 = sshll.u32 %s267_s11, 4  ;;  %s146_s12 = int_to_ptr.vmem [resolvable:$true] %s145_s12 }
  0x28   :  { %v43_v5 = vld [vmem:[#allocation2] sm:$0xff]  ;;  %v182_v6 = vpack.c.bf16 %v48_v4, %v47_v2  ;;  %v44_v7 = vld [vmem:[#allocation2 + $0x8] sm:$0xff]  ;;  %s235_s13 = scalar_lea.vmem %s146_s12, 256  ;;  %p240_p3 = scmp.lt.s32.totalorder %s146_s12, %s146_s12 }
  0x29   :  { %175 = vmatprep.mubr.msk.f32.mxu0 %vm56_vm0, %v43_v5  ;;  %179 = vmatprep.subr.bf16.mxu0 %v178_v3  ;;  %v158_v8 = vld [vmem:[%s338_s2] ss:$0 sm:$0xff]  ;;  %p236_p2 = scmp.ne.s32.totalorder %s146_s12, %s235_s13  ;;  %p241_p4 = scmp.lt.s32.totalorder %s235_s13, %s235_s13 }
  0x2a   :  { %181 = vmatpush3.bf16.msra.mxu0 %v178_v3 }
  0x2b   :  { %183 = vmatprep.subr.bf16.mxu0 %v182_v6  ;;  %p242_p5 = por %p241_p4, %p240_p3 }
  0x2d   :  { %p243_p6 = pnand %p242_p5, %p236_p2 }
  0x2e   :  { %185 = vmatpush3.bf16.msra.mxu0 %v182_v6 }
  0x31   :  { %176 = vmatmul.mubr.msk.f32.vlgmr.msra.gmra.mrb[0].mxu0 %vm56_vm0, %v44_v7 }
 0x104   :  { %v177_v9 = vpop.f32.mrb[0].mxu0 }
 0x105   :  { %v135_v10 = vadd.f32 %v177_v9, %v158_v8  ;;  %v129_v11 = vpop.f32.mrb[1].mxu0 }
 0x106   :  { %v130_v12 = vadd.f32 %v158_v8, %v129_v11 }
 0x107   :  { %139 = vst [vmem:[#allocation7 + $0x8] sm:$0xff] %v135_v10 }
 0x108   :  { %138 = vst [vmem:[#allocation7] sm:$0xff] %v130_v12 }
 0x109   :  { %246 = shalt.err (!%p243_p6)
}
 0x10a   :  { %s247_s2 = scalar_lea.hbm %s339_s3, 256 }
 0x10b   :  { %p248_p7 = scmp.ne.s32.totalorder %s339_s3, %s247_s2  ;;  %p251_p8 = scmp.lt.u32.totalorder %s247_s2, %s339_s3 }
 0x10d   :  { %p253_p9 = pnand %p251_p8, %p248_p7 }
 0x10f   :  { %256 = shalt.err (!%p253_p9)
}
 0x110   :  { %151 = dma.vmem_to_hbm [thread:$0]  %s146_s12, 256, %s339_s3, [#allocation4], %s264_s22, %s264_s22, %s265_s23  }
 0x111   :  { %261 = dma.done.wait [#allocation4], 256  }
 0x112   :  { %262 = vsyncadd [#allocation4], 4294967040 }
 0x113   :  { %155 = vsyncpa [#allocation3], 1 }
 0x114   :  { %156 = vsyncpa [#allocation6], 1 }
 0x115   :  { %157 = vsyncpa [#allocation4], 1 }

</bundles_post_ra>
